<compile_context>
chip_gen: v7x
topology: tpu7x:2x2x1
jax: 0.10.0
libtpu: 0.0.40
codegen_flags: <defaults>
</compile_context>

<pallas_src>
import functools
import math

import jax
import jax.numpy as jnp
from jax.experimental import pallas as pl
from jax.experimental.pallas import tpu as pltpu


_NEG_INF = -1e30  # finite "-inf": keeps the online-softmax rescale NaN-free


def _round_up(x, m):
    return ((x + m - 1) // m) * m


# --------------------------------------------------------------------------
# Phase 1: projection  h = X_aug @ W_pad  (padded per-head layout + ones col)
#          and packed attention scores  s = h @ A_packed
# --------------------------------------------------------------------------
def _gat_project_kernel(x_ref, w_ref, ap_ref, h_ref, s_ref):
    # bf16 x bf16 -> f32 accumulation on the MXU.  W is pre-laid-out so the
    # output already has the per-head padded layout (hidden_p cols per head)
    # with a constant-1 column per head (from the constant-1 input feature)
    # that later doubles as the softmax denominator.
    h = jnp.dot(x_ref[...], w_ref[...], preferred_element_type=jnp.float32)
    h_ref[...] = h.astype(h_ref.dtype)          # bf16, lane-dense (d_p % 128 == 0)
    # Scores from the *f32* h (same numerics as the reference).  One packed
    # matmul replaces 2*n_heads matvecs.  Not fused into the first matmul so
    # the scores do not pick up extra bf16 rounding of W@A.
    s_ref[...] = jnp.dot(h, ap_ref[...], preferred_element_type=jnp.float32)


# --------------------------------------------------------------------------
# Phase 2: masked softmax over neighbours + attention-weighted aggregation
# --------------------------------------------------------------------------
def _gat_attn_kernel(flags_ref, s_src_ref, s_dst_ref, adj_ref, h_ref, out_ref,
                     m_ref, acc_ref, *, n_heads, hidden, hidden_p):
    i = pl.program_id(0)
    j = pl.program_id(1)
    num_j = pl.num_programs(1)

    @pl.when(j == 0)
    def _init():
        m_ref[...] = jnp.full_like(m_ref, _NEG_INF)
        acc_ref[...] = jnp.zeros_like(acc_ref)

    # Skip tiles with no edges at all (flag precomputed in the wrapper and
    # scalar-prefetched into SMEM): the O(tm*tn*H) VPU/EUP work runs only on
    # non-empty tiles.  Skipping is exact for every node with >= 1 edge
    # (spurious all-masked contributions are rescaled to 0 by alpha anyway).
    @pl.when(flags_ref[i * num_j + j] != 0)
    def _compute():
        s_src = s_src_ref[...]                   # (tm, H)  f32   a1 . h_i per head
        s_dst = s_dst_ref[...]                   # (H, tn)  f32   a2 . h_j per head
        # Additive mask bias hoisted out of the head loop (1 cmp + 1 select
        # per tile instead of per head).
        bias = jnp.where(adj_ref[...] != 0, 0.0, _NEG_INF)        # (tm, tn) f32
        m_prev = m_ref[...]                      # (tm, H)

        m_parts = []
        acc_parts = []
        for head in range(n_heads):              # small & static -> unrolled
            c0 = head * hidden_p
            # e[i, j] = a1.h_i + a2.h_j ; LeakyReLU(0.01) then mask (torch order).
            e = s_src[:, head:head + 1] + s_dst[head:head + 1, :]  # (tm, tn)
            e = jnp.maximum(e, 0.01 * e) + bias
            # Flash-style online softmax over neighbours j.
            m_p = m_prev[:, head:head + 1]
            m_n = jnp.maximum(m_p, jnp.max(e, axis=1, keepdims=True))
            alpha = jnp.exp(m_p - m_n)                             # rescales old partials
            p = jnp.exp(e - m_n).astype(h_ref.dtype)               # masked -> underflow to 0
            # One MXU matmul per head yields the weighted feature sum AND the
            # softmax denominator (the per-head constant-1 column of h).
            contrib = jnp.dot(p, h_ref[:, c0:c0 + hidden_p],
                              preferred_element_type=jnp.float32)  # (tm, hidden_p)
            m_parts.append(m_n)
            acc_parts.append(alpha * acc_ref[:, c0:c0 + hidden_p] + contrib)

        # Single lane-dense scratch writes per grid step (no per-head masked
        # stores to 1..16-lane slices).
        m_ref[...] = jnp.concatenate(m_parts, axis=1)              # (tm, H)
        acc_ref[...] = jnp.concatenate(acc_parts, axis=1)          # (tm, d_p)

    @pl.when(j == num_j - 1)
    def _finalize():
        acc = acc_ref[...]
        parts = []
        for head in range(n_heads):
            c0 = head * hidden_p
            denom = acc[:, c0 + hidden:c0 + hidden + 1]            # accumulated sum(p)
            inv = pl.reciprocal(denom, approx=True)                # EUP, nearly free
            parts.append(acc[:, c0:c0 + hidden_p] * inv)
        out_ref[...] = jnp.concatenate(parts, axis=1)              # lane-dense store


# --------------------------------------------------------------------------
# Wrapper
# --------------------------------------------------------------------------
def _choose_tiles(n, max_tile):
    """(8,128)-friendly row/col tiles and the padded node count."""
    n128 = _round_up(n, 128)
    tile = min(_round_up(max_tile, 128), n128)
    n_pad = _round_up(n128, tile)            # grid divides evenly
    tm = tn = tile
    # v7x megacore: keep >= 2 blocks on the parallel (i) axis when possible so
    # both TensorCores get work (single-TC v5e/v6e unaffected).
    if n_pad // tm < 2 and n_pad >= 256:
        tm = n_pad // 2
    return tm, tn, n_pad


def gat_forward(x, w, a, adj, *, n_heads,
                max_tile=1024,                        # a few MiB/step: fits v7x 64 MiB VMEM
                vmem_limit_bytes=48 * 1024 * 1024):
    n, d_in = x.shape
    d_out = w.shape[1]
    hidden = d_out // n_heads
    assert d_out == n_heads * hidden

    # Per-head padded width: >= hidden + 1 (extra constant-1 column = softmax
    # denominator) and chosen so d_p = n_heads * hidden_p is a multiple of 128,
    # making every acc / out store in phase 2 lane-dense.
    q = 128 // math.gcd(n_heads, 128)
    hidden_p = _round_up(hidden + 1, q)
    d_p = n_heads * hidden_p

    tm, tn, n_pad = _choose_tiles(n, max_tile)
    gi, gj = n_pad // tm, n_pad // tn

    # ---- plain-JAX parameter / layout prep (small, traced once) ----
    d_in_aug = _round_up(d_in + 1, 8)                 # +1 constant-1 feature
    x_p = jnp.zeros((n_pad, d_in_aug), jnp.float32)
    x_p = x_p.at[:n, :d_in].set(x.astype(jnp.float32))
    x_p = x_p.at[:n, d_in].set(1.0)
    x_p16 = x_p.astype(jnp.bfloat16)

    w_blk = jnp.pad(w.astype(jnp.float32).reshape(d_in, n_heads, hidden),
                    ((0, 0), (0, 0), (0, hidden_p - hidden))).reshape(d_in, d_p)
    w_pad = jnp.zeros((d_in_aug, d_p), jnp.float32).at[:d_in, :].set(w_blk)
    ones_cols = jnp.arange(n_heads) * hidden_p + hidden
    w_pad = w_pad.at[d_in, ones_cols].set(1.0)        # h[:, head*hidden_p + hidden] == 1
    w_pad16 = w_pad.astype(jnp.bfloat16)

    a_f = a.astype(jnp.float32).reshape(-1)           # (2*hidden,)
    a_packed = jnp.zeros((d_p, 2 * n_heads), jnp.float32)
    for head in range(n_heads):
        c0 = head * hidden_p
        a_packed = a_packed.at[c0:c0 + hidden, head].set(a_f[:hidden])
        a_packed = a_packed.at[c0:c0 + hidden, n_heads + head].set(a_f[hidden:])

    adj_p = jnp.zeros((n_pad, n_pad), jnp.int8).at[:n, :n].set(adj.astype(jnp.int8))
    # Per-(i, j)-block "has any edge" flags (1-D to avoid 2-D SMEM padding).
    flags = jnp.any(adj_p.reshape(gi, tm, gj, tn) != 0, axis=(1, 3))
    flags = flags.astype(jnp.int32).reshape(-1)

    # ---- phase 1: projection + packed attention scores ----
    h_aug, s = pl.pallas_call(
        _gat_project_kernel,
        out_shape=(jax.ShapeDtypeStruct((n_pad, d_p), jnp.bfloat16),
                   jax.ShapeDtypeStruct((n_pad, 2 * n_heads), jnp.float32)),
        grid_spec=pltpu.PrefetchScalarGridSpec(
            num_scalar_prefetch=0,
            grid=(gi,),
            in_specs=[pl.BlockSpec((tm, d_in_aug), lambda r: (r, 0)),
                      pl.BlockSpec((d_in_aug, d_p), lambda r: (0, 0)),
                      pl.BlockSpec((d_p, 2 * n_heads), lambda r: (0, 0))],
            out_specs=[pl.BlockSpec((tm, d_p), lambda r: (r, 0)),
                       pl.BlockSpec((tm, 2 * n_heads), lambda r: (r, 0))]),
        compiler_params=pltpu.CompilerParams(
            dimension_semantics=("parallel",),
            vmem_limit_bytes=vmem_limit_bytes),
    )(x_p16, w_pad16, a_packed)

    s_src = s[:, :n_heads]                     # (n_pad, H)
    s_dst_t = jnp.transpose(s[:, n_heads:])    # (H, n_pad) -- transposed once, tiny

    # ---- phase 2: tiled masked-softmax attention with online softmax ----
    # (h is re-streamed per i row-block; keeping it VMEM-resident is a further
    # option for very large d_out — compute-bound here, left as-is.)
    kernel = functools.partial(_gat_attn_kernel, n_heads=n_heads,
                               hidden=hidden, hidden_p=hidden_p)
    out_p = pl.pallas_call(
        kernel,
        out_shape=jax.ShapeDtypeStruct((n_pad, d_p), jnp.float32),
        grid_spec=pltpu.PrefetchScalarGridSpec(
            num_scalar_prefetch=1,
            grid=(gi, gj),
            in_specs=[
                pl.BlockSpec((tm, n_heads), lambda i, j, f: (i, 0)),   # s_src
                pl.BlockSpec((n_heads, tn), lambda i, j, f: (0, j)),   # s_dst^T
                pl.BlockSpec((tm, tn), lambda i, j, f: (i, j)),        # adjacency (int8)
                pl.BlockSpec((tn, d_p), lambda i, j, f: (j, 0)),       # h_aug (bf16)
            ],
            out_specs=pl.BlockSpec((tm, d_p), lambda i, j, f: (i, 0)),
            scratch_shapes=[
                pltpu.VMEM((tm, n_heads), jnp.float32),   # running max per head
                pltpu.VMEM((tm, d_p), jnp.float32),       # acc slab (features + denom / head)
            ]),
        compiler_params=pltpu.CompilerParams(
            dimension_semantics=("parallel", "arbitrary"),
            vmem_limit_bytes=vmem_limit_bytes),
    )(flags, s_src, s_dst_t, adj_p, h_aug)

    # Drop per-head padding / denominator columns and padded rows.
    out = out_p.reshape(n_pad, n_heads, hidden_p)[:n, :, :hidden]
    return out.reshape(n, n_heads * hidden)


# --------------------------------------------------------------------------
# Module-faithful helpers + pure-JAX reference
# --------------------------------------------------------------------------
def edge_list_to_adjacency(edges, n):
    # Faithfully reproduces the module's `src, dst = (edges[0], edges[0])`
    # quirk -> only "diagonal" entries for nodes appearing in edges[0] are set.
    src = edges[0]
    dst = edges[0]
    adj = jnp.zeros((n, n), dtype=jnp.int8)
    return adj.at[src, dst].set(1)


def kaiming_normal(key, shape):
    # torch kaiming_normal_ default: gain=sqrt(2), fan_in = shape[1] for 2D.
    fan_in = shape[1]
    std = (2.0 / fan_in) ** 0.5
    return std * jax.random.normal(key, shape, dtype=jnp.float32)


def gat_reference(x, w, a, adj, *, n_heads):
    # Pure-JAX transcription of the PyTorch forward (X@W with bf16 inputs /
    # f32 accumulation to mirror the kernel's MXU dtype; rest in f32).
    n, d_out = x.shape[0], w.shape[1]
    hidden = d_out // n_heads
    h = jnp.dot(x.astype(jnp.bfloat16), w.astype(jnp.bfloat16),
                preferred_element_type=jnp.float32).reshape(n, n_heads, hidden)
    s1 = jnp.einsum('nhf,f->nh', h, a[:hidden, 0])
    s2 = jnp.einsum('nhf,f->nh', h, a[hidden:, 0])
    e = s1[:, None, :] + s2[None, :, :]                  # e[i, j, head]
    e = jnp.where(e >= 0.0, e, 0.01 * e)                 # LeakyReLU then mask (torch order)
    e = jnp.where((adj == 0)[:, :, None], -jnp.inf, e)
    attn = jax.nn.softmax(e, axis=1)                     # softmax over neighbours j
    out = jnp.einsum('ijh,jhf->ihf', attn, h)
    return out.reshape(n, d_out)


if __name__ == "__main__":
    keys = jax.random.split(jax.random.PRNGKey(0), 12)
    heads = 4

    # ---- Test 1: module defaults (N=8, 16->32, 4 heads), edge-list quirk
    #      adjacency (self loops only), single-tile path with row padding. ----
    N1, d_in1, d_out1 = 8, 16, 32
    x1 = jax.random.normal(keys[0], (N1, d_in1), dtype=jnp.float32)
    W1 = kaiming_normal(keys[1], (d_in1, d_out1))
    A1 = kaiming_normal(keys[2], (2 * (d_out1 // heads), 1))
    edges = jnp.stack([jnp.arange(N1, dtype=jnp.int32),
                       jnp.roll(jnp.arange(N1, dtype=jnp.int32), 1)])
    adj1 = edge_list_to_adjacency(edges, N1)

    out1 = jax.block_until_ready(gat_forward(x1, W1, A1, adj1, n_heads=heads))
    ref1 = gat_reference(x1, W1, A1, adj1, n_heads=heads)
    assert out1.shape == (N1, d_out1)
    assert bool(jnp.allclose(out1, ref1, atol=5e-2, rtol=5e-2)), (
        float(jnp.max(jnp.abs(out1 - ref1))))

    # ---- Test 2: dense random adjacency, 2x2 grid, online softmax across
    #      multiple j blocks (no tiles skipped). ----
    N2, d_in2, d_out2 = 256, 64, 64
    x2 = jax.random.normal(keys[3], (N2, d_in2), dtype=jnp.float32)
    W2 = kaiming_normal(keys[4], (d_in2, d_out2))
    A2 = kaiming_normal(keys[5], (2 * (d_out2 // heads), 1))
    adj2 = ((jax.random.uniform(keys[6], (N2, N2)) < 0.3)
            | jnp.eye(N2, dtype=bool)).astype(jnp.int8)

    out2 = jax.block_until_ready(
        gat_forward(x2, W2, A2, adj2, n_heads=heads, max_tile=128))
    ref2 = gat_reference(x2, W2, A2, adj2, n_heads=heads)
    assert out2.shape == (N2, d_out2)
    assert bool(jnp.allclose(out2, ref2, atol=5e-2, rtol=5e-2)), (
        float(jnp.max(jnp.abs(out2 - ref2))))

    # ---- Test 3: N not a multiple of 128 (padding path) + block-sparse
    #      adjacency: two of the four (i, j) tiles are empty and get skipped
    #      via the scalar-prefetched block flags. ----
    N3, d_in3, d_out3 = 200, 48, 64
    x3 = jax.random.normal(keys[7], (N3, d_in3), dtype=jnp.float32)
    W3 = kaiming_normal(keys[8], (d_in3, d_out3))
    A3 = kaiming_normal(keys[9], (2 * (d_out3 // heads), 1))
    blk = jax.random.uniform(keys[10], (100, 100)) < 0.2
    adj3 = (jnp.zeros((N3, N3), dtype=bool).at[:100, :100].set(blk)
            | jnp.eye(N3, dtype=bool)).astype(jnp.int8)

    out3 = jax.block_until_ready(
        gat_forward(x3, W3, A3, adj3, n_heads=heads, max_tile=128))
    ref3 = gat_reference(x3, W3, A3, adj3, n_heads=heads)
    assert out3.shape == (N3, d_out3)
    assert bool(jnp.allclose(out3, ref3, atol=5e-2, rtol=5e-2)), (
        float(jnp.max(jnp.abs(out3 - ref3))))

    print("KERNEL_OK")
</pallas_src>

<mosaic_0001>
module attributes {stable_mosaic.version = 11 : i64} {
  func.func @_gat_project_kernel(%arg0: i32, %arg1: memref<128x24xbf16, #tpu.memory_space<vmem>>, %arg2: memref<24x128xbf16, #tpu.memory_space<vmem>>, %arg3: memref<128x8xf32, #tpu.memory_space<vmem>>, %arg4: memref<128x128xbf16, #tpu.memory_space<vmem>>, %arg5: memref<128x8xf32, #tpu.memory_space<vmem>>) attributes {dimension_semantics = [#tpu.dimension_semantics<parallel>], iteration_bounds = array<i64: 1>, scalar_prefetch = 0 : i64, scratch_operands = 0 : i64, tpu.core_type = #tpu.core_type<tc>, window_params = [{transform_indices = @transform_0, window_bounds = array<i64: 128, 24>}, {pipeline_mode = #tpu.pipeline_mode<synchronous>, transform_indices = @transform_1, window_bounds = array<i64: 24, 128>}, {pipeline_mode = #tpu.pipeline_mode<synchronous>, transform_indices = @transform_2, window_bounds = array<i64: 128, 8>}, {transform_indices = @transform_3, window_bounds = array<i64: 128, 128>}, {transform_indices = @transform_4, window_bounds = array<i64: 128, 8>}]} {
    %c0 = arith.constant 0 : index
    %c0_0 = arith.constant 0 : index
    %0 = vector.load %arg1[%c0, %c0_0] : memref<128x24xbf16, #tpu.memory_space<vmem>>, vector<128x24xbf16>
    %c0_1 = arith.constant 0 : index
    %c0_2 = arith.constant 0 : index
    %1 = vector.load %arg2[%c0_1, %c0_2] : memref<24x128xbf16, #tpu.memory_space<vmem>>, vector<24x128xbf16>
    %cst = arith.constant dense<0.000000e+00> : vector<128x128xf32>
    %2 = tpu.matmul %0, %1, %cst {dimension_numbers = #tpu.dot_dimension_numbers<[1], [0], [0], [1], [0, 0, 1, 1], [], []>} : vector<128x24xbf16>, vector<24x128xbf16>, vector<128x128xf32> -> vector<128x128xf32>
    %3 = arith.truncf %2 : vector<128x128xf32> to vector<128x128xbf16>
    %c0_3 = arith.constant 0 : index
    %c0_4 = arith.constant 0 : index
    %4 = vector.load %arg4[%c0_3, %c0_4] : memref<128x128xbf16, #tpu.memory_space<vmem>>, vector<128x128xbf16>
    tpu.vector_store %arg4[%c0_3, %c0_4], %3 {strides = array<i32>} : memref<128x128xbf16, #tpu.memory_space<vmem>>, vector<128x128xbf16>,
    %c0_5 = arith.constant 0 : index
    %c0_6 = arith.constant 0 : index
    %5 = vector.load %arg3[%c0_5, %c0_6] : memref<128x8xf32, #tpu.memory_space<vmem>>, vector<128x8xf32>
    %cst_7 = arith.constant dense<0.000000e+00> : vector<128x8xf32>
    %6 = tpu.matmul %2, %5, %cst_7 {dimension_numbers = #tpu.dot_dimension_numbers<[1], [0], [0], [1], [0, 0, 1, 1], [], []>} : vector<128x128xf32>, vector<128x8xf32>, vector<128x8xf32> -> vector<128x8xf32>
    %c0_8 = arith.constant 0 : index
    %c0_9 = arith.constant 0 : index
    %7 = vector.load %arg5[%c0_8, %c0_9] : memref<128x8xf32, #tpu.memory_space<vmem>>, vector<128x8xf32>
    tpu.vector_store %arg5[%c0_8, %c0_9], %6 {strides = array<i32>} : memref<128x8xf32, #tpu.memory_space<vmem>>, vector<128x8xf32>,
    return
  }
  func.func @transform_0(%arg0: i32) -> (i32, i32) {
    %c0_i32 = arith.constant 0 : i32
    %c0_i32_0 = arith.constant 0 : i32
    return %arg0, %c0_i32 : i32, i32
  }
  func.func @transform_1(%arg0: i32) -> (i32, i32) {
    %c0_i32 = arith.constant 0 : i32
    %c0_i32_0 = arith.constant 0 : i32
    %c0_i32_1 = arith.constant 0 : i32
    return %c0_i32, %c0_i32_0 : i32, i32
  }
  func.func @transform_2(%arg0: i32) -> (i32, i32) {
    %c0_i32 = arith.constant 0 : i32
    %c0_i32_0 = arith.constant 0 : i32
    %c0_i32_1 = arith.constant 0 : i32
    return %c0_i32, %c0_i32_0 : i32, i32
  }
  func.func @transform_3(%arg0: i32) -> (i32, i32) {
    %c0_i32 = arith.constant 0 : i32
    %c0_i32_0 = arith.constant 0 : i32
    return %arg0, %c0_i32 : i32, i32
  }
  func.func @transform_4(%arg0: i32) -> (i32, i32) {
    %c0_i32 = arith.constant 0 : i32
    %c0_i32_0 = arith.constant 0 : i32
    return %arg0, %c0_i32 : i32, i32
  }
}

</mosaic_0001>

<bundles_post_ra>
// kernel: tpu_custom_call.1
= control target key start
LH: loop header
LB: loop body
LE: loop exit
PB: predicated region body
PF: predicated region fallthrough
CT: control target
= control target key end

     0   :  { %vm111_vm0 = vcmask 1043456   ;;  %vm86_vm1 = vcmask 195584   ;;  %s981_s0 = inlined_call_operand.vmem [shape: bf16[128,24], index: 0, kind: input, shape index: {}]   ;;  %s982_s1 = inlined_call_operand.vmem [shape: bf16[24,128], index: 1, kind: input, shape index: {}]   ;;  %s983_s2 = inlined_call_operand.vmem [shape: f32[128,8], index: 2, kind: input, shape index: {}]   ;;  %s984_s3 = inlined_call_operand.hbm [shape: bf16[128,128], index: 3, kind: output, shape index: {0}]   ;;  %s985_s4 = inlined_call_operand.vmem [shape: f32[128,8], index: 4, kind: output, shape index: {1}]  }
   0x1   :  { %v757_v0 = vld [vmem:[%s982_s1] sm:$0xff]   ;;  %v758_v1 = vld [vmem:[%s982_s1 + $0x8] ss:$0 sps:$4 sm:$0xff]   ;;  %v761_v5 = vld [vmem:[%s981_s0 + $0x10] sm:$0xff]  }
   0x2   :  { %629 = vmatprep.subr.bf16.mxu0 %v757_v0  ;;  %v759_v2 = vld [vmem:[%s981_s0] sm:$0xff]   ;;  %v113_v3 = vsel %vm111_vm0, %v758_v1, 0  ;;  %v760_v4 = vld [vmem:[%s981_s0 + $0x8] sm:$0xff]   ;;  %v294_v8 = vld [vmem:[%s983_s2 + $0x10] sm:$0xff] }
   0x3   :  { %630 = vmatpush3.bf16.msra.mxu0 %v757_v0  ;;  %633 = vmatprep.mubr.msk.bf16.mxu0 %vm86_vm1, %v759_v2  ;;  %v292_v6 = vld [vmem:[%s983_s2] sm:$0xff]  ;;  %v293_v7 = vld [vmem:[%s983_s2 + $0x8] sm:$0xff]  ;;  %v295_v9 = vld [vmem:[%s983_s2 + $0x18] sm:$0xff] }
   0x4   :  { %753 = vmatprep.subr.msk.bf16.mxu0 %vm111_vm0, %v758_v1  ;;  %v705_v10 = vpack.c.bf16 %v293_v7, %v292_v6  ;;  %v709_v11 = vpack.c.bf16 %v295_v9, %v294_v8  ;;  %v296_v12 = vld [vmem:[%s983_s2 + $0x20] sm:$0xff]  ;;  %v297_v13 = vld [vmem:[%s983_s2 + $0x28] sm:$0xff]  ;;  %v762_v14 = vld [vmem:[%s981_s0 + $0x18] sm:$0xff]  }
   0x6   :  { %737 = vmatprep.subr.bf16.mxu1 %v705_v10 }
   0x7   :  { %632 = vmatpush3.bf16.msra.mxu0 %v113_v3  ;;  %745 = vmatpush3.bf16.msra.mxu1 %v705_v10 }
   0x8   :  { %706 = vmatprep.subr.bf16.mxu0 %v705_v10 }
   0xa   :  { %634 = vmatmul.mubr.msk.bf16.vlgmr.msra.gmra.mrb[0].mxu0 %vm86_vm1, %v760_v4 }
   0xb   :  { %637 = vmatprep.mubr.msk.bf16.mxu0 %vm86_vm1, %v761_v5  ;;  %708 = vmatpush3.bf16.msra.mxu0 %v705_v10 }
   0xc   :  { %10 = vsyncpa [#allocation3], 0  ;;  %v763_v15 = vld [vmem:[%s981_s0 + $0x20] sm:$0xff]   ;;  %710 = vmatprep.subr.bf16.mxu0 %v709_v11  ;;  %738 = vmatprep.subr.bf16.mxu1 %v709_v11  ;;  %v713_v16 = vpack.c.bf16 %v297_v13, %v296_v12  ;;  %v298_v17 = vld [vmem:[%s983_s2 + $0x30] sm:$0xff] }
   0xd   :  { %v299_v18 = vld [vmem:[%s983_s2 + $0x38] sm:$0xff]  ;;  %746 = vmatpush3.bf16.msra.mxu1 %v709_v11  ;;  %v300_v20 = vld [vmem:[%s983_s2 + $0x40] sm:$0xff]  ;;  %v301_v21 = vld [vmem:[%s983_s2 + $0x48] sm:$0xff] }
   0xe   :  { %v717_v19 = vpack.c.bf16 %v299_v18, %v298_v17  ;;  %739 = vmatprep.subr.bf16.mxu1 %v713_v16  ;;  %v764_v22 = vld [vmem:[%s981_s0 + $0x28] sm:$0xff]   ;;  %v765_v23 = vld [vmem:[%s981_s0 + $0x30] sm:$0xff]   ;;  %v721_v24 = vpack.c.bf16 %v301_v21, %v300_v20  ;;  %v303_v26 = vld [vmem:[%s983_s2 + $0x58] sm:$0xff] }
   0xf   :  { %712 = vmatpush3.bf16.msra.mxu0 %v709_v11  ;;  %v302_v25 = vld [vmem:[%s983_s2 + $0x50] sm:$0xff]  ;;  %v304_v28 = vld [vmem:[%s983_s2 + $0x60] sm:$0xff]  ;;  %v305_v29 = vld [vmem:[%s983_s2 + $0x68] sm:$0xff] }
  0x10   :  { %714 = vmatprep.subr.bf16.mxu0 %v713_v16  ;;  %v725_v27 = vpack.c.bf16 %v303_v26, %v302_v25  ;;  %v766_v30 = vld [vmem:[%s981_s0 + $0x38] sm:$0xff]   ;;  %v729_v31 = vpack.c.bf16 %v305_v29, %v304_v28  ;;  %v306_v32 = vld [vmem:[%s983_s2 + $0x70] sm:$0xff]  ;;  %s791_s0 = smov [#allocation2]  }
  0x11   :  { %747 = vmatpush3.bf16.msra.mxu1 %v713_v16  ;;  %v307_v33 = vld [vmem:[%s983_s2 + $0x78] sm:$0xff]  ;;  %s475_s2 = sshll.u32 %s791_s0, 4  ;;  %s476_s2 = int_to_ptr.vmem [resolvable:$true] %s475_s2 }
  0x12   :  { %638 = vmatmul.mubr.msk.bf16.gmra.mrb[4].mxu0 %vm86_vm1, %v762_v14  ;;  %740 = vmatprep.subr.bf16.mxu1 %v717_v19  ;;  %v733_v34 = vpack.c.bf16 %v307_v33, %v306_v32  ;;  %s767_s13 = scalar_lea.vmem %s476_s2, 1024  ;;  %p772_p1 = scmp.lt.s32.totalorder %s476_s2, %s476_s2 }
  0x13   :  { %641 = vmatprep.mubr.msk.bf16.mxu0 %vm86_vm1, %v763_v15  ;;  %716 = vmatpush3.bf16.msra.mxu0 %v713_v16  ;;  %p768_p0 = scmp.ne.s32.totalorder %s476_s2, %s767_s13  ;;  %p773_p2 = scmp.lt.s32.totalorder %s767_s13, %s767_s13 }
  0x14   :  { %718 = vmatprep.subr.bf16.mxu0 %v717_v19 }
  0x15   :  { %748 = vmatpush3.bf16.msra.mxu1 %v717_v19  ;;  %p774_p3 = por %p773_p2, %p772_p1 }
  0x16   :  { %741 = vmatprep.subr.bf16.mxu1 %v721_v24 }
  0x17   :  { %720 = vmatpush3.bf16.msra.mxu0 %v717_v19  ;;  %p775_p4 = pnand %p774_p3, %p768_p0 }
  0x18   :  { %722 = vmatprep.subr.bf16.mxu0 %v721_v24 }
  0x19   :  { %749 = vmatpush3.bf16.msra.mxu1 %v721_v24 }
  0x1a   :  { %642 = vmatmul.mubr.msk.bf16.gmra.mrb[8].mxu0 %vm86_vm1, %v764_v22  ;;  %742 = vmatprep.subr.bf16.mxu1 %v725_v27 }
  0x1b   :  { %645 = vmatprep.mubr.msk.bf16.mxu0 %vm86_vm1, %v765_v23  ;;  %724 = vmatpush3.bf16.msra.mxu0 %v721_v24 }
  0x1c   :  { %726 = vmatprep.subr.bf16.mxu0 %v725_v27 }
  0x1d   :  { %750 = vmatpush3.bf16.msra.mxu1 %v725_v27 }
  0x1e   :  { %743 = vmatprep.subr.bf16.mxu1 %v729_v31 }
  0x1f   :  { %728 = vmatpush3.bf16.msra.mxu0 %v725_v27 }
  0x20   :  { %730 = vmatprep.subr.bf16.mxu0 %v729_v31 }
  0x21   :  { %751 = vmatpush3.bf16.msra.mxu1 %v729_v31 }
  0x22   :  { %646 = vmatmul.mubr.msk.bf16.gmra.mrb[12].mxu0 %vm86_vm1, %v766_v30  ;;  %744 = vmatprep.subr.bf16.mxu1 %v733_v34 }
  0x23   :  { %732 = vmatpush3.bf16.msra.mxu0 %v729_v31 }
  0x24   :  { %734 = vmatprep.subr.bf16.mxu0 %v733_v34 }
  0x25   :  { %752 = vmatpush3.bf16.msra.mxu1 %v733_v34 }
  0x27   :  { %736 = vmatpush3.bf16.msra.mxu0 %v733_v34 }
  0xdd   :  { %v635_v35 = vpop.f32.mrb[0].mxu0 }
  0xde   :  { %v149_v36 = vpop.f32.mrb[1].mxu0 }
  0xdf   :  { %v636_v37 = vpop.f32.mrb[2].mxu0  ;;  %681 = vmatprep.mubr.f32.mxu0 %v149_v36 }
  0xe0   :  { %v548_v38 = vpack.c.bf16 %v636_v37, %v635_v35  ;;  %v152_v39 = vpop.f32.mrb[3].mxu0 }
  0xe1   :  { %v543_v40 = vpack.c.bf16 %v152_v39, %v149_v36  ;;  %682 = vmatmul.mubr.f32.vlgmr.msra.gmra.mrb[16].mxu0 %v152_v39 }
  0xe2   :  { %580 = vst [vmem:[#allocation2 + $0x8] sm:$0xff] %v548_v38   ;;  %684 = vmatprep.mubr.f32.mxu0 %v635_v35 }
  0xe3   :  { %544 = vst [vmem:[#allocation2] sm:$0xff] %v543_v40  }
  0xe5   :  { %v639_v41 = vpop.f32.mrb[4].mxu0  ;;  %685 = vmatmul.mubr.f32.gmra.mrb[18].mxu0 %v636_v37 }
  0xe6   :  { %v165_v42 = vpop.f32.mrb[5].mxu0  ;;  %690 = vmatprep.mubr.f32.mxu1 %v639_v41 }
  0xe7   :  { %v640_v43 = vpop.f32.mrb[6].mxu0  ;;  %687 = vmatprep.mubr.f32.mxu0 %v165_v42 }
  0xe8   :  { %v558_v44 = vpack.c.bf16 %v640_v43, %v639_v41  ;;  %v168_v45 = vpop.f32.mrb[7].mxu0  ;;  %691 = vmatmul.mubr.f32.vlgmr.msra.gmra.mrb[0].mxu1 %v640_v43 }
  0xe9   :  { %v553_v46 = vpack.c.bf16 %v168_v45, %v165_v42  ;;  %688 = vmatmul.mubr.f32.gmra.mrb[20].mxu0 %v168_v45 }
  0xea   :  { %582 = vst [vmem:[#allocation2 + $0x18] sm:$0xff] %v558_v44  }
  0xeb   :  { %581 = vst [vmem:[#allocation2 + $0x10] sm:$0xff] %v553_v46  }
  0xed   :  { %v643_v47 = vpop.f32.mrb[8].mxu0 }
  0xee   :  { %v181_v48 = vpop.f32.mrb[9].mxu0 }
  0xef   :  { %v644_v49 = vpop.f32.mrb[10].mxu0  ;;  %693 = vmatprep.mubr.f32.mxu1 %v181_v48 }
  0xf0   :  { %v568_v50 = vpack.c.bf16 %v644_v49, %v643_v47  ;;  %v184_v51 = vpop.f32.mrb[11].mxu0 }
  0xf1   :  { %v563_v52 = vpack.c.bf16 %v184_v51, %v181_v48  ;;  %694 = vmatmul.mubr.f32.gmra.mrb[2].mxu1 %v184_v51 }
  0xf2   :  { %584 = vst [vmem:[#allocation2 + $0x28] sm:$0xff] %v568_v50   ;;  %696 = vmatprep.mubr.f32.mxu1 %v643_v47 }
  0xf3   :  { %583 = vst [vmem:[#allocation2 + $0x20] sm:$0xff] %v563_v52  }
  0xf5   :  { %v647_v53 = vpop.f32.mrb[12].mxu0  ;;  %697 = vmatmul.mubr.f32.gmra.mrb[4].mxu1 %v644_v49 }
  0xf6   :  { %v197_v54 = vpop.f32.mrb[13].mxu0 }
  0xf7   :  { %v648_v55 = vpop.f32.mrb[14].mxu0  ;;  %699 = vmatprep.mubr.f32.mxu1 %v197_v54 }
  0xf8   :  { %v578_v56 = vpack.c.bf16 %v648_v55, %v647_v53  ;;  %v200_v57 = vpop.f32.mrb[15].mxu0 }
  0xf9   :  { %v573_v58 = vpack.c.bf16 %v200_v57, %v197_v54  ;;  %700 = vmatmul.mubr.f32.gmra.mrb[6].mxu1 %v200_v57 }
  0xfa   :  { %586 = vst [vmem:[#allocation2 + $0x38] sm:$0xff] %v578_v56   ;;  %702 = vmatprep.mubr.f32.mxu1 %v647_v53 }
  0xfb   :  { %585 = vst [vmem:[#allocation2 + $0x30] sm:$0xff] %v573_v58  }
  0xfd   :  { %703 = vmatmul.mubr.f32.gmra.mrb[8].mxu1 %v648_v55 }
  0xfe   :  { %778 = shalt.err (!%p775_p4)
}
  0xff   :  { %s779_s16 = scalar_lea.hbm %s984_s3, 1024 }
 0x100   :  { %p780_p5 = scmp.ne.s32.totalorder %s984_s3, %s779_s16  ;;  %p783_p6 = scmp.lt.u32.totalorder %s779_s16, %s984_s3 }
 0x102   :  { %p785_p7 = pnand %p783_p6, %p780_p5 }
 0x104   :  { %788 = shalt.err (!%p785_p7)
}
 0x105   :  { %s792_s21 = smov 64   ;;  %s793_s22 = smov 4   ;;  %vm453_vm2 = vcmask 64512  }
 0x106   :  { %481 = dma.vmem_to_hbm [thread:$0]  %s476_s2, 1024, %s984_s3, [#allocation3], %s792_s21, %s792_s21, %s793_s22  }
 0x1b4   :  { %v683_v59 = vpop.f32.mrb[16].mxu0 }
 0x1b5   :  { %455 = vst.msk [vmem:[%s985_s4 + $0x8] sm:$0xff] %vm453_vm2, %v683_v59  ;;  %v374_v60 = vpop.f32.mrb[17].mxu0 }
 0x1b6   :  { %454 = vst.msk [vmem:[%s985_s4] sm:$0xff] %vm453_vm2, %v374_v60 }
 0x1b8   :  { %v686_v61 = vpop.f32.mrb[18].mxu0 }
 0x1b9   :  { %457 = vst.msk [vmem:[%s985_s4 + $0x18] sm:$0xff] %vm453_vm2, %v686_v61  ;;  %v384_v62 = vpop.f32.mrb[19].mxu0 }
 0x1ba   :  { %456 = vst.msk [vmem:[%s985_s4 + $0x10] sm:$0xff] %vm453_vm2, %v384_v62 }
 0x1bb   :  { %v692_v63 = vpop.f32.mrb[0].mxu1 }
 0x1bc   :  { %461 = vst.msk [vmem:[%s985_s4 + $0x38] sm:$0xff] %vm453_vm2, %v692_v63  ;;  %v689_v0 = vpop.f32.mrb[20].mxu0  ;;  %v404_v1 = vpop.f32.mrb[1].mxu1 }
 0x1bd   :  { %459 = vst.msk [vmem:[%s985_s4 + $0x28] sm:$0xff] %vm453_vm2, %v689_v0  ;;  %460 = vst.msk [vmem:[%s985_s4 + $0x30] sm:$0xff] %vm453_vm2, %v404_v1  ;;  %v394_v2 = vpop.f32.mrb[21].mxu0 }
 0x1be   :  { %458 = vst.msk [vmem:[%s985_s4 + $0x20] sm:$0xff] %vm453_vm2, %v394_v2 }
 0x1c4   :  { %v695_v3 = vpop.f32.mrb[2].mxu1 }
 0x1c5   :  { %463 = vst.msk [vmem:[%s985_s4 + $0x48] sm:$0xff] %vm453_vm2, %v695_v3  ;;  %v414_v4 = vpop.f32.mrb[3].mxu1 }
 0x1c6   :  { %462 = vst.msk [vmem:[%s985_s4 + $0x40] sm:$0xff] %vm453_vm2, %v414_v4 }
 0x1c8   :  { %v698_v5 = vpop.f32.mrb[4].mxu1 }
 0x1c9   :  { %465 = vst.msk [vmem:[%s985_s4 + $0x58] sm:$0xff] %vm453_vm2, %v698_v5  ;;  %v424_v6 = vpop.f32.mrb[5].mxu1 }
 0x1ca   :  { %464 = vst.msk [vmem:[%s985_s4 + $0x50] sm:$0xff] %vm453_vm2, %v424_v6 }
 0x1cc   :  { %v701_v7 = vpop.f32.mrb[6].mxu1 }
 0x1cd   :  { %467 = vst.msk [vmem:[%s985_s4 + $0x68] sm:$0xff] %vm453_vm2, %v701_v7  ;;  %v434_v8 = vpop.f32.mrb[7].mxu1 }
 0x1ce   :  { %466 = vst.msk [vmem:[%s985_s4 + $0x60] sm:$0xff] %vm453_vm2, %v434_v8 }
 0x1d0   :  { %v704_v9 = vpop.f32.mrb[8].mxu1 }
 0x1d1   :  { %469 = vst.msk [vmem:[%s985_s4 + $0x78] sm:$0xff] %vm453_vm2, %v704_v9  ;;  %v444_v10 = vpop.f32.mrb[9].mxu1 }
 0x1d2   :  { %468 = vst.msk [vmem:[%s985_s4 + $0x70] sm:$0xff] %vm453_vm2, %v444_v10 }
 0x1d3   :  { %789 = dma.done.wait [#allocation3], 1024  }
 0x1d4   :  { %790 = vsyncadd [#allocation3], 4294966272 }
 0x1d5   :  { %489 = vsyncpa [#allocation3], 1 }

</bundles_post_ra>
